<compile_context>
chip_gen: v7x
topology: tpu7x:2x2x1
jax: 0.10.0
libtpu: 0.0.40
codegen_flags: <defaults>
</compile_context>

<pallas_src>
import functools

import jax
import jax.numpy as jnp
from jax.experimental import pallas as pl
from jax.experimental.pallas import tpu as pltpu


_ROWS_PER_BLOCK_CAP = 512   # lane-rows (of width W) per block along the packed seq axis


def _device_config():
    """Generation-dependent tiling knobs (host query at trace time)."""
    kind = ""
    try:
        kind = jax.devices()[0].device_kind.lower()
    except Exception:
        pass
    if "v7" in kind:
        # 2 TensorCores / 64 MiB VMEM / ~3.2 TB/s: modest blocks, feed both TCs.
        return dict(block_bytes=2 << 20, vmem_limit=48 << 20,
                    table_budget=12 << 20, split_heads=True)
    if any(t in kind for t in ("v5e", "v5 lite", "v6e", "v6 lite")):
        # Single TensorCore / 128 MiB VMEM: bigger blocks, no forced head split.
        return dict(block_bytes=4 << 20, vmem_limit=64 << 20,
                    table_budget=12 << 20, split_heads=False)
    # Unknown chip: conservative defaults.
    return dict(block_bytes=1 << 20, vmem_limit=32 << 20,
                table_budget=8 << 20, split_heads=True)


def _seq_tile(n_rows: int) -> int:
    # A block's second-to-last dim must be a multiple of 8 or the full extent.
    return n_rows if n_rows <= _ROWS_PER_BLOCK_CAP else _ROWS_PER_BLOCK_CAP


def _rotate(x_ref, cos, sin_ahead, sin_behind, o_ref, half):
    """out = x*cos + rotate_half(x)*sin  (concat-half rotation).

    rotate_half is expressed as two XLU rolls combined with host-side
    pre-masked, sign-folded sin tables; roll wrap-around lanes always land
    where the masked sin table is zero.  f32 compute like the reference.
    """
    x = x_ref[...].astype(jnp.float32)
    w = x.shape[-1]
    ahead = pltpu.roll(x, w - half, x.ndim - 1)     # x[(j + half) % w]
    behind = pltpu.roll(x, half, x.ndim - 1)        # x[(j - half) % w]
    out = (x * cos[None, :, :]
           + ahead * sin_ahead[None, :, :]
           + behind * sin_behind[None, :, :])
    o_ref[...] = out.astype(o_ref.dtype)


def _rope_kernel_resident(q_ref, k_ref, *refs, half, n_sq, n_sk, ts_q, ts_k,
                          q_off_rows, shared_q):
    """Tables are VMEM-resident; the current rows are sliced with pl.ds."""
    if shared_q:
        k_tabs = refs[0:3]
        q_tabs = k_tabs
        qo_ref, ko_ref = refs[3], refs[4]
    else:
        q_tabs = refs[0:3]
        k_tabs = refs[3:6]
        qo_ref, ko_ref = refs[6], refs[7]

    s = pl.program_id(1)

    def _slice_tables(tabs, n_blocks, ts, row_off):
        if n_blocks == 1:
            start = row_off                               # static start
        else:                                             # ts and row_off are 8-aligned
            start = pl.multiple_of(row_off + s * ts, 8)
        return [t[pl.ds(start, ts), :] for t in tabs]

    # q only occupies the first n_sq steps of the (longer) k sweep; beyond that
    # its block index is clamped so the redundant recompute is skipped.
    @pl.when(s < n_sq)
    def _():
        cq, saq, sbq = _slice_tables(q_tabs, n_sq, ts_q,
                                     q_off_rows if shared_q else 0)
        _rotate(q_ref, cq, saq, sbq, qo_ref, half)

    ck, sak, sbk = _slice_tables(k_tabs, n_sk, ts_k, 0)
    _rotate(k_ref, ck, sak, sbk, ko_ref, half)


def _rope_kernel_blocked(q_ref, k_ref, cq_ref, saq_ref, sbq_ref,
                         ck_ref, sak_ref, sbk_ref, qo_ref, ko_ref, *,
                         half, n_sq):
    """Fallback for very long sequences: tables streamed per grid block."""
    @pl.when(pl.program_id(1) < n_sq)
    def _():
        _rotate(q_ref, cq_ref[...], saq_ref[...], sbq_ref[...], qo_ref, half)

    _rotate(k_ref, ck_ref[...], sak_ref[...], sbk_ref[...], ko_ref, half)


def _rope_tables(n_pos, dim, base, distance_scale):
    """cos plus pre-masked, sign-folded sin tables, each [n_pos, dim] f32."""
    inv_freq = 1.0 / (base ** (jnp.arange(0, dim, 2, dtype=jnp.float32) / dim))
    t = jnp.arange(n_pos, dtype=jnp.float32) * distance_scale
    freqs = jnp.outer(t, inv_freq)                       # [n_pos, dim/2]
    zeros = jnp.zeros_like(freqs)
    cos = jnp.cos(jnp.concatenate([freqs, freqs], -1))   # [n_pos, dim]
    s = jnp.sin(freqs)
    sin_ahead = jnp.concatenate([-s, zeros], -1)         # pairs with x[(j+half) % w]
    sin_behind = jnp.concatenate([zeros, s], -1)         # pairs with x[(j-half) % w]
    return cos, sin_ahead, sin_behind


@functools.partial(jax.jit, static_argnames=("base", "distance_scale"))
def rotary_embedding_forward(q, k, *, base=10000.0, distance_scale=1.0):
    """Forward of RotaryEmbeddingESM (seq_dim=-2).

    q: [..., Sq, D], k: [..., Sk, D] with Sq <= Sk.  q uses the last Sq rows of
    the Sk-long cos/sin table (right=Sk, length=Sq) exactly as
    apply_rotary_pos_emb in the PyTorch module.
    """
    assert q.shape[-1] == k.shape[-1], "q/k head dims must match"
    assert q.shape[:-2] == k.shape[:-2], "q/k leading dims must match"
    D = q.shape[-1]
    Sq, Sk = q.shape[-2], k.shape[-2]
    assert D % 2 == 0 and Sq <= Sk

    orig_q_shape, orig_k_shape = q.shape, k.shape
    lead = q.shape[:-2]
    BH = 1
    for d_ in lead:
        BH *= d_
    q3 = q.reshape(BH, Sq, D)
    k3 = k.reshape(BH, Sk, D)

    cfg = _device_config()

    # ---- lane-dense packing: view (S, D) as (S/P, P*D == 128) when D | 128 ----
    P = 128 // D if (D < 128 and 128 % D == 0) else 1
    W = P * D
    Sq_pad = -(-Sq // P) * P
    Sk_pad = -(-Sk // P) * P
    if Sq_pad != Sq:
        q3 = jnp.pad(q3, ((0, 0), (0, Sq_pad - Sq), (0, 0)))
    if Sk_pad != Sk:
        k3 = jnp.pad(k3, ((0, 0), (0, Sk_pad - Sk), (0, 0)))
    sq_rows, sk_rows = Sq_pad // P, Sk_pad // P
    qf = q3.reshape(BH, sq_rows, W)     # contiguous views -> free reshapes
    kf = k3.reshape(BH, sk_rows, W)

    # ---- grid: (head blocks, seq blocks) ----
    ts_q = _seq_tile(sq_rows)
    ts_k = _seq_tile(sk_rows)
    n_sq = pl.cdiv(sq_rows, ts_q)
    n_sk = pl.cdiv(sk_rows, ts_k)       # >= n_sq because Sq <= Sk

    itemsize = q.dtype.itemsize
    tb = max(1, cfg["block_bytes"] // max(1, ts_k * W * itemsize))
    tb = min(tb, BH)
    if cfg["split_heads"] and BH >= 2:
        tb = min(tb, -(-BH // 2))       # >= 2 head blocks so both TCs get work
    n_bh = pl.cdiv(BH, tb)

    # ---- cos / sin tables ----
    q_pos_off = Sk - Sq
    k_rows_needed = n_sk * ts_k
    q_rows_needed = n_sq * ts_q
    # Reuse the k table for q when the q offset lands on an 8-row (sublane)
    # boundary of the packed layout (always true for Sq == Sk).
    shared_q = (q_pos_off % P == 0) and ((q_pos_off // P) % 8 == 0)
    q_off_rows = q_pos_off // P if shared_q else 0
    shared_rows = max(k_rows_needed, q_off_rows + q_rows_needed)

    table_bytes = 4 * W * (3 * shared_rows if shared_q
                           else 3 * (k_rows_needed + q_rows_needed))
    resident = table_bytes <= cfg["table_budget"]
    use_shared = resident and shared_q
    tab_rows_k = shared_rows if use_shared else k_rows_needed

    n_pos = max(tab_rows_k * P, q_pos_off + q_rows_needed * P)
    cos, sin_a, sin_b = _rope_tables(n_pos, D, base, distance_scale)

    def table_view(tab, start_pos, nrows):
        sl = jax.lax.slice_in_dim(tab, start_pos, start_pos + nrows * P, axis=0)
        return sl.reshape(nrows, W)

    k_tables = tuple(table_view(t, 0, tab_rows_k) for t in (cos, sin_a, sin_b))
    q_tables = ()
    if not use_shared:
        q_tables = tuple(table_view(t, q_pos_off, q_rows_needed)
                         for t in (cos, sin_a, sin_b))

    # ---- BlockSpecs ----
    q_idx = lambda i, s: (i, jnp.minimum(s, n_sq - 1), 0)
    k_idx = lambda i, s: (i, s, 0)
    q_data_spec = pl.BlockSpec((tb, ts_q, W), q_idx)
    k_data_spec = pl.BlockSpec((tb, ts_k, W), k_idx)

    if resident:
        tab_inputs = k_tables if use_shared else q_tables + k_tables
        # Constant block index -> fetched once, stays VMEM-resident.
        tab_specs = [pl.BlockSpec(t.shape, lambda i, s: (0, 0)) for t in tab_inputs]
        kernel = functools.partial(
            _rope_kernel_resident, half=D // 2, n_sq=n_sq, n_sk=n_sk,
            ts_q=ts_q, ts_k=ts_k, q_off_rows=q_off_rows, shared_q=use_shared)
    else:
        tab_inputs = q_tables + k_tables
        tab_specs = (
            [pl.BlockSpec((ts_q, W), lambda i, s: (jnp.minimum(s, n_sq - 1), 0))] * 3
            + [pl.BlockSpec((ts_k, W), lambda i, s: (s, 0))] * 3)
        kernel = functools.partial(_rope_kernel_blocked, half=D // 2, n_sq=n_sq)

    qo, ko = pl.pallas_call(
        kernel,
        out_shape=(jax.ShapeDtypeStruct((BH, sq_rows, W), q.dtype),
                   jax.ShapeDtypeStruct((BH, sk_rows, W), k.dtype)),
        grid_spec=pltpu.PrefetchScalarGridSpec(
            num_scalar_prefetch=0,
            grid=(n_bh, n_sk),
            in_specs=[q_data_spec, k_data_spec] + list(tab_specs),
            out_specs=[q_data_spec, k_data_spec],
        ),
        compiler_params=pltpu.CompilerParams(
            dimension_semantics=("parallel", "arbitrary"),
            vmem_limit_bytes=cfg["vmem_limit"],
        ),
    )(qf, kf, *tab_inputs)

    q_out = qo.reshape(lead + (Sq_pad, D))
    k_out = ko.reshape(lead + (Sk_pad, D))
    if Sq_pad != Sq:
        q_out = q_out[..., :Sq, :]
    if Sk_pad != Sk:
        k_out = k_out[..., :Sk, :]
    return q_out.reshape(orig_q_shape), k_out.reshape(orig_k_shape)


def _reference_forward(q, k, base, distance_scale):
    """Pure-JAX reference implementing the PyTorch module's math."""
    dim = q.shape[-1]
    sq, sk = q.shape[-2], k.shape[-2]
    inv_freq = 1.0 / (base ** (jnp.arange(0, dim, 2, dtype=jnp.float32) / dim))
    t = jnp.arange(sk, dtype=jnp.float32) * distance_scale
    emb = jnp.concatenate([jnp.outer(t, inv_freq)] * 2, -1)
    cos, sin = jnp.cos(emb), jnp.sin(emb)

    def apply(x, c, s):
        xf = x.astype(jnp.float32)
        x1, x2 = xf[..., :dim // 2], xf[..., dim // 2:]
        rot = jnp.concatenate([-x2, x1], axis=-1)
        return (xf * c + rot * s).astype(x.dtype)

    return apply(q, cos[sk - sq:sk], sin[sk - sq:sk]), apply(k, cos, sin)


if __name__ == "__main__":
    key = jax.random.PRNGKey(0)

    configs = [
        # (B, H, Sq, Sk, D, dtype)
        (2, 4, 8, 16, 32, jnp.float32),    # packed (P=4), q offset not 8-aligned
        (2, 4, 8, 16, 128, jnp.float32),   # unpacked, shared (8-aligned) table
        (2, 4, 3, 5, 64, jnp.float32),     # packed path with seq padding (S % P != 0)
        (1, 2, 4, 10, 128, jnp.bfloat16),  # bf16 I/O (f32 compute), separate q table
    ]
    for (B, H, Sq, Sk, D, dtype) in configs:
        key, kq, kk = jax.random.split(key, 3)
        q = jax.random.normal(kq, (B, H, Sq, D), dtype=jnp.float32).astype(dtype)
        k = jax.random.normal(kk, (B, H, Sk, D), dtype=jnp.float32).astype(dtype)

        q_out, k_out = rotary_embedding_forward(
            q, k, base=10000.0, distance_scale=1.0)
        jax.block_until_ready((q_out, k_out))

        q_ref, k_ref = _reference_forward(q, k, 10000.0, 1.0)
        assert q_out.shape == q.shape and q_out.dtype == q.dtype
        assert k_out.shape == k.shape and k_out.dtype == k.dtype
        tol = 1e-5 if dtype == jnp.float32 else 2e-2
        assert jnp.allclose(q_out.astype(jnp.float32), q_ref.astype(jnp.float32),
                            atol=tol, rtol=tol), (B, H, Sq, Sk, D, dtype)
        assert jnp.allclose(k_out.astype(jnp.float32), k_ref.astype(jnp.float32),
                            atol=tol, rtol=tol), (B, H, Sq, Sk, D, dtype)

    print("KERNEL_OK")
</pallas_src>

<mosaic_0001>
module attributes {stable_mosaic.version = 11 : i64} {
  func.func @_rope_kernel_resident(%arg0: i32, %arg1: i32, %arg2: memref<4x2x128xf32, #tpu.memory_space<vmem>>, %arg3: memref<4x4x128xf32, #tpu.memory_space<vmem>>, %arg4: memref<2x128xf32, #tpu.memory_space<vmem>>, %arg5: memref<2x128xf32, #tpu.memory_space<vmem>>, %arg6: memref<2x128xf32, #tpu.memory_space<vmem>>, %arg7: memref<4x128xf32, #tpu.memory_space<vmem>>, %arg8: memref<4x128xf32, #tpu.memory_space<vmem>>, %arg9: memref<4x128xf32, #tpu.memory_space<vmem>>, %arg10: memref<4x2x128xf32, #tpu.memory_space<vmem>>, %arg11: memref<4x4x128xf32, #tpu.memory_space<vmem>>) attributes {dimension_semantics = [#tpu.dimension_semantics<parallel>, #tpu.dimension_semantics<arbitrary>], iteration_bounds = array<i64: 2, 1>, scalar_prefetch = 0 : i64, scratch_operands = 0 : i64, tpu.core_type = #tpu.core_type<tc>, window_params = [{transform_indices = @transform_0, window_bounds = array<i64: 4, 2, 128>}, {transform_indices = @transform_1, window_bounds = array<i64: 4, 4, 128>}, {pipeline_mode = #tpu.pipeline_mode<synchronous>, transform_indices = @transform_2, window_bounds = array<i64: 2, 128>}, {pipeline_mode = #tpu.pipeline_mode<synchronous>, transform_indices = @transform_3, window_bounds = array<i64: 2, 128>}, {pipeline_mode = #tpu.pipeline_mode<synchronous>, transform_indices = @transform_4, window_bounds = array<i64: 2, 128>}, {pipeline_mode = #tpu.pipeline_mode<synchronous>, transform_indices = @transform_5, window_bounds = array<i64: 4, 128>}, {pipeline_mode = #tpu.pipeline_mode<synchronous>, transform_indices = @transform_6, window_bounds = array<i64: 4, 128>}, {pipeline_mode = #tpu.pipeline_mode<synchronous>, transform_indices = @transform_7, window_bounds = array<i64: 4, 128>}, {transform_indices = @transform_8, window_bounds = array<i64: 4, 2, 128>}, {transform_indices = @transform_9, window_bounds = array<i64: 4, 4, 128>}]} {
    %c1_i32 = arith.constant 1 : i32
    %0 = arith.cmpi slt, %arg1, %c1_i32 : i32
    %1 = arith.extui %0 : i1 to i32
    %c0_i32 = arith.constant 0 : i32
    %2 = arith.cmpi ne, %1, %c0_i32 : i32
    scf.if %2 {
      %c0_11 = arith.constant 0 : index
      %c0_12 = arith.constant 0 : index
      %21 = vector.load %arg4[%c0_11, %c0_12] : memref<2x128xf32, #tpu.memory_space<vmem>>, vector<2x128xf32>
      %c0_13 = arith.constant 0 : index
      %c0_14 = arith.constant 0 : index
      %22 = vector.load %arg5[%c0_13, %c0_14] : memref<2x128xf32, #tpu.memory_space<vmem>>, vector<2x128xf32>
      %c0_15 = arith.constant 0 : index
      %c0_16 = arith.constant 0 : index
      %23 = vector.load %arg6[%c0_15, %c0_16] : memref<2x128xf32, #tpu.memory_space<vmem>>, vector<2x128xf32>
      %c0_17 = arith.constant 0 : index
      %c0_18 = arith.constant 0 : index
      %c0_19 = arith.constant 0 : index
      %24 = vector.load %arg2[%c0_17, %c0_18, %c0_19] : memref<4x2x128xf32, #tpu.memory_space<vmem>>, vector<4x2x128xf32>
      %c112_i32_20 = arith.constant 112 : i32
      %25 = tpu.dynamic_rotate %24 by %c112_i32_20 dim 2 : vector<4x2x128xf32>, i32 -> vector<4x2x128xf32>
      %c16_i32_21 = arith.constant 16 : i32
      %26 = tpu.dynamic_rotate %24 by %c16_i32_21 dim 2 : vector<4x2x128xf32>, i32 -> vector<4x2x128xf32>
      %27 = vector.shape_cast %21 : vector<2x128xf32> to vector<1x2x128xf32>
      %28 = vector.broadcast %27 : vector<1x2x128xf32> to vector<4x2x128xf32>
      %29 = arith.mulf %24, %28 : vector<4x2x128xf32>
      %30 = vector.shape_cast %22 : vector<2x128xf32> to vector<1x2x128xf32>
      %31 = vector.broadcast %30 : vector<1x2x128xf32> to vector<4x2x128xf32>
      %32 = arith.mulf %25, %31 : vector<4x2x128xf32>
      %33 = arith.addf %29, %32 : vector<4x2x128xf32>
      %34 = vector.shape_cast %23 : vector<2x128xf32> to vector<1x2x128xf32>
      %35 = vector.broadcast %34 : vector<1x2x128xf32> to vector<4x2x128xf32>
      %36 = arith.mulf %26, %35 : vector<4x2x128xf32>
      %37 = arith.addf %33, %36 : vector<4x2x128xf32>
      %c0_22 = arith.constant 0 : index
      %c0_23 = arith.constant 0 : index
      %c0_24 = arith.constant 0 : index
      %38 = vector.load %arg10[%c0_22, %c0_23, %c0_24] : memref<4x2x128xf32, #tpu.memory_space<vmem>>, vector<4x2x128xf32>
      tpu.vector_store %arg10[%c0_22, %c0_23, %c0_24], %37 {strides = array<i32>} : memref<4x2x128xf32, #tpu.memory_space<vmem>>, vector<4x2x128xf32>,
    } else {
    }
    %c0 = arith.constant 0 : index
    %c0_0 = arith.constant 0 : index
    %3 = vector.load %arg7[%c0, %c0_0] : memref<4x128xf32, #tpu.memory_space<vmem>>, vector<4x128xf32>
    %c0_1 = arith.constant 0 : index
    %c0_2 = arith.constant 0 : index
    %4 = vector.load %arg8[%c0_1, %c0_2] : memref<4x128xf32, #tpu.memory_space<vmem>>, vector<4x128xf32>
    %c0_3 = arith.constant 0 : index
    %c0_4 = arith.constant 0 : index
    %5 = vector.load %arg9[%c0_3, %c0_4] : memref<4x128xf32, #tpu.memory_space<vmem>>, vector<4x128xf32>
    %c0_5 = arith.constant 0 : index
    %c0_6 = arith.constant 0 : index
    %c0_7 = arith.constant 0 : index
    %6 = vector.load %arg3[%c0_5, %c0_6, %c0_7] : memref<4x4x128xf32, #tpu.memory_space<vmem>>, vector<4x4x128xf32>
    %c112_i32 = arith.constant 112 : i32
    %7 = tpu.dynamic_rotate %6 by %c112_i32 dim 2 : vector<4x4x128xf32>, i32 -> vector<4x4x128xf32>
    %c16_i32 = arith.constant 16 : i32
    %8 = tpu.dynamic_rotate %6 by %c16_i32 dim 2 : vector<4x4x128xf32>, i32 -> vector<4x4x128xf32>
    %9 = vector.shape_cast %3 : vector<4x128xf32> to vector<1x4x128xf32>
    %10 = vector.broadcast %9 : vector<1x4x128xf32> to vector<4x4x128xf32>
    %11 = arith.mulf %6, %10 : vector<4x4x128xf32>
    %12 = vector.shape_cast %4 : vector<4x128xf32> to vector<1x4x128xf32>
    %13 = vector.broadcast %12 : vector<1x4x128xf32> to vector<4x4x128xf32>
    %14 = arith.mulf %7, %13 : vector<4x4x128xf32>
    %15 = arith.addf %11, %14 : vector<4x4x128xf32>
    %16 = vector.shape_cast %5 : vector<4x128xf32> to vector<1x4x128xf32>
    %17 = vector.broadcast %16 : vector<1x4x128xf32> to vector<4x4x128xf32>
    %18 = arith.mulf %8, %17 : vector<4x4x128xf32>
    %19 = arith.addf %15, %18 : vector<4x4x128xf32>
    %c0_8 = arith.constant 0 : index
    %c0_9 = arith.constant 0 : index
    %c0_10 = arith.constant 0 : index
    %20 = vector.load %arg11[%c0_8, %c0_9, %c0_10] : memref<4x4x128xf32, #tpu.memory_space<vmem>>, vector<4x4x128xf32>
    tpu.vector_store %arg11[%c0_8, %c0_9, %c0_10], %19 {strides = array<i32>} : memref<4x4x128xf32, #tpu.memory_space<vmem>>, vector<4x4x128xf32>,
    return
  }
  func.func @transform_0(%arg0: i32, %arg1: i32) -> (i32, i32, i32) {
    %c0_i32 = arith.constant 0 : i32
    %0 = arith.minsi %arg1, %c0_i32 : i32
    %c0_i32_0 = arith.constant 0 : i32
    %c0_i32_1 = arith.constant 0 : i32
    return %arg0, %0, %c0_i32_0 : i32, i32, i32
  }
  func.func @transform_1(%arg0: i32, %arg1: i32) -> (i32, i32, i32) {
    %c0_i32 = arith.constant 0 : i32
    %c0_i32_0 = arith.constant 0 : i32
    return %arg0, %arg1, %c0_i32 : i32, i32, i32
  }
  func.func @transform_2(%arg0: i32, %arg1: i32) -> (i32, i32) {
    %c0_i32 = arith.constant 0 : i32
    %c0_i32_0 = arith.constant 0 : i32
    %c0_i32_1 = arith.constant 0 : i32
    return %c0_i32, %c0_i32_0 : i32, i32
  }
  func.func @transform_3(%arg0: i32, %arg1: i32) -> (i32, i32) {
    %c0_i32 = arith.constant 0 : i32
    %c0_i32_0 = arith.constant 0 : i32
    %c0_i32_1 = arith.constant 0 : i32
    return %c0_i32, %c0_i32_0 : i32, i32
  }
  func.func @transform_4(%arg0: i32, %arg1: i32) -> (i32, i32) {
    %c0_i32 = arith.constant 0 : i32
    %c0_i32_0 = arith.constant 0 : i32
    %c0_i32_1 = arith.constant 0 : i32
    return %c0_i32, %c0_i32_0 : i32, i32
  }
  func.func @transform_5(%arg0: i32, %arg1: i32) -> (i32, i32) {
    %c0_i32 = arith.constant 0 : i32
    %c0_i32_0 = arith.constant 0 : i32
    %c0_i32_1 = arith.constant 0 : i32
    return %c0_i32, %c0_i32_0 : i32, i32
  }
  func.func @transform_6(%arg0: i32, %arg1: i32) -> (i32, i32) {
    %c0_i32 = arith.constant 0 : i32
    %c0_i32_0 = arith.constant 0 : i32
    %c0_i32_1 = arith.constant 0 : i32
    return %c0_i32, %c0_i32_0 : i32, i32
  }
  func.func @transform_7(%arg0: i32, %arg1: i32) -> (i32, i32) {
    %c0_i32 = arith.constant 0 : i32
    %c0_i32_0 = arith.constant 0 : i32
    %c0_i32_1 = arith.constant 0 : i32
    return %c0_i32, %c0_i32_0 : i32, i32
  }
  func.func @transform_8(%arg0: i32, %arg1: i32) -> (i32, i32, i32) {
    %c0_i32 = arith.constant 0 : i32
    %0 = arith.minsi %arg1, %c0_i32 : i32
    %c0_i32_0 = arith.constant 0 : i32
    %c0_i32_1 = arith.constant 0 : i32
    return %arg0, %0, %c0_i32_0 : i32, i32, i32
  }
  func.func @transform_9(%arg0: i32, %arg1: i32) -> (i32, i32, i32) {
    %c0_i32 = arith.constant 0 : i32
    %c0_i32_0 = arith.constant 0 : i32
    return %arg0, %arg1, %c0_i32 : i32, i32, i32
  }
}

</mosaic_0001>

<bundles_post_ra>
// kernel: rotary_embedding_forward.1
= control target key start
LH: loop header
LB: loop body
LE: loop exit
PB: predicated region body
PF: predicated region fallthrough
CT: control target
= control target key end

     0   :  { %s804_s30 = smov 0   ;;  %s806_s10 = smov 0   ;;  %s885_s0 = inlined_call_operand.vmem [shape: f32[8,2,128], index: 0, kind: input, shape index: {}]   ;;  %s886_s1 = inlined_call_operand.vmem [shape: f32[8,4,128], index: 1, kind: input, shape index: {}]   ;;  %s887_s2 = inlined_call_operand.vmem [shape: f32[2,128], index: 2, kind: input, shape index: {}]   ;;  %s888_s3 = inlined_call_operand.vmem [shape: f32[2,128], index: 3, kind: input, shape index: {}]   ;;  %s889_s4 = inlined_call_operand.vmem [shape: f32[2,128], index: 4, kind: input, shape index: {}]   ;;  %s890_s5 = inlined_call_operand.vmem [shape: f32[4,128], index: 5, kind: input, shape index: {}]   ;;  %s891_s6 = inlined_call_operand.vmem [shape: f32[4,128], index: 6, kind: input, shape index: {}]   ;;  %s892_s7 = inlined_call_operand.vmem [shape: f32[4,128], index: 7, kind: input, shape index: {}]   ;;  %s893_s8 = inlined_call_operand.vmem [shape: f32[8,2,128], index: 8, kind: output, shape index: {0}]   ;;  %s894_s9 = inlined_call_operand.vmem [shape: f32[8,4,128], index: 9, kind: output, shape index: {1}]  }
   0x1   :  { %s808_s11 = smov 0  }
   0x2 LB: > { %s32_s12 = sadd.s32 1, %s746_s10  ;;  %p691_p0 = scmp.ge.s32.totalorder %s750_s11, 1  ;;  %s750_s11 = sphi %s808_s11, %s20_s11   ;;  %s746_s10 = sphi %s806_s10, %s896_s10   ;;  %s742_s30 = sphi %s804_s30, %s895_s30  }
   0x3   : > { %p34_p1 = scmp.ge.s32.totalorder %s32_s12, 2  ;;  %p340_p2 = scmp.lt.s32.totalorder %s750_s11, 3 }
   0x5   : > { %s898_s12 = smov (%p34_p1, %s32_s12), 0  ;;  %p341_p3 = pnand %p691_p0, %p340_p2 }
   0x6   : > { %s692_s13 = sshll.u32 (!%p341_p3), %s742_s30, 2  ;;  %s752_s22 = smov (!%p341_p3), 112   ;;  %v450_v10 = vld [vmem:[%s887_s2] sm:$0x3] (!%p341_p3) }
   0x7   : > { %344 = sbr.rel (%p341_p3) target bundleno = 166 (0xa6), region = 52  ;;  %p405_p4 = scmp.lt.s32.totalorder (!%p341_p3), %s692_s13, 7  ;;  %v451_v11 = vld [vmem:[%s888_s3] sm:$0x3] (!%p341_p3) }
   0x8   : > { %s753_s23 = smov (!%p341_p3), 16   ;;  %v497_v16 = vld [vmem:[%s890_s5] sm:$0xf] (!%p341_p3) }
   0x9   : > { %v498_v17 = vld [vmem:[%s891_s6] sm:$0xf] (!%p341_p3) }
   0xa   : > { %v452_v18 = vld [vmem:[%s889_s4] sm:$0x3] (!%p341_p3) }
   0xb   : > { %v499_v25 = vld [vmem:[%s892_s7] sm:$0xf] (!%p341_p3) }
   0xe   : > { %s900_s13 = smov (!%p405_p4, %s692_s13), 7 }
   0xf   : > { %s693_s14 = sshll.u32 %s900_s13, 1  ;;  %s695_s15 = sshll.u32 %s900_s13, 2 }
  0x10   : > { %s411_s18 = scalar_lea.vmem %s885_s0, %s693_s14  ;;  %s422_s21 = scalar_lea.vmem %s886_s1, %s695_s15 }
  0x11   : > { %v454_v0 = vld [vmem:[%s411_s18 + $0x2] sm:$0x3]  ;;  %v453_v1 = vld [vmem:[%s411_s18] sm:$0x3]  ;;  %v501_v2 = vld [vmem:[%s422_s21 + $0x4] sm:$0xf]  ;;  %s867_s26 = scalar_lea.vmem %s894_s9, %s695_s15 }
  0x12   : > { %459 = vrot.lane.b32.xlu1 %v454_v0, %s752_s22  ;;  %457 = vrot.lane.b32.xlu0 %v453_v1, %s752_s22  ;;  %v500_v3 = vld [vmem:[%s422_s21] sm:$0xf]  ;;  %v455_v4 = vld [vmem:[%s411_s18 + $0x4] sm:$0x3]  ;;  %v473_v14 = vmul.f32 %v453_v1, %v450_v10  ;;  %v474_v29 = vmul.f32 %v454_v0, %v450_v10  ;;  %v521_v36 = vmul.f32 %v501_v2, %v497_v16 }
  0x13   : > { %v502_v5 = vld [vmem:[%s422_s21 + $0x8] sm:$0xf]  ;;  %v456_v6 = vld [vmem:[%s411_s18 + $0x6] sm:$0x3]  ;;  %v503_v7 = vld [vmem:[%s422_s21 + $0xc] sm:$0xf]  ;;  %v520_v21 = vmul.f32 %v500_v3, %v497_v16  ;;  %s856_s21 = scalar_lea.vmem %s893_s8, %s693_s14  ;;  %v475_v41 = vmul.f32 %v455_v4, %v450_v10 }
  0x14   : > { %v522_v42 = vmul.f32 %v502_v5, %v497_v16  ;;  %v476_v50 = vmul.f32 %v456_v6, %v450_v10  ;;  %v523_v51 = vmul.f32 %v503_v7, %v497_v16 }
  0x16   : > { %506 = vrot.lane.b32.xlu1 %v501_v2, %s752_s22  ;;  %504 = vrot.lane.b32.xlu0 %v500_v3, %s752_s22 }
  0x1a   : > { %465 = vrot.lane.b32.xlu1 %v453_v1, %s753_s23  ;;  %461 = vrot.lane.b32.xlu0 %v455_v4, %s752_s22 }
  0x1e   : > { %512 = vrot.lane.b32.xlu1 %v500_v3, %s753_s23  ;;  %508 = vrot.lane.b32.xlu0 %v502_v5, %s752_s22 }
  0x22   : > { %467 = vrot.lane.b32.xlu1 %v454_v0, %s753_s23  ;;  %463 = vrot.lane.b32.xlu0 %v456_v6, %s752_s22 }
  0x26   : > { %514 = vrot.lane.b32.xlu1 %v501_v2, %s753_s23  ;;  %510 = vrot.lane.b32.xlu0 %v503_v7, %s752_s22 }
  0x2a   : > { %516 = vrot.lane.b32.xlu1 %v502_v5, %s753_s23  ;;  %469 = vrot.lane.b32.xlu0 %v455_v4, %s753_s23 }
  0x2e   : > { %518 = vrot.lane.b32.xlu1 %v503_v7, %s753_s23  ;;  %471 = vrot.lane.b32.xlu0 %v456_v6, %s753_s23 }
  0x84   : > { %v460_v8 = vpop.permute.xlu1 %459  ;;  %v458_v9 = vpop.permute.xlu0 %457 }
  0x85   : > { %v477_v15 = vmul.f32 %v458_v9, %v451_v11  ;;  %v478_v30 = vmul.f32 %v460_v8, %v451_v11 }
  0x87   : > { %v481_v22 = vadd.f32 %v477_v15, %v473_v14  ;;  %v482_v37 = vadd.f32 %v478_v30, %v474_v29 }
  0x88   : > { %v507_v12 = vpop.permute.xlu1 %506  ;;  %v505_v13 = vpop.permute.xlu0 %504 }
  0x89   : > { %v524_v23 = vmul.f32 %v505_v13, %v498_v17  ;;  %v525_v38 = vmul.f32 %v507_v12, %v498_v17 }
  0x8b   : > { %v528_v31 = vadd.f32 %v524_v23, %v520_v21  ;;  %v529_v47 = vadd.f32 %v525_v38, %v521_v36 }
  0x8c   : > { %v466_v19 = vpop.permute.xlu1 %465  ;;  %v462_v20 = vpop.permute.xlu0 %461 }
  0x8d   : > { %v485_v24 = vmul.f32 %v466_v19, %v452_v18  ;;  %v479_v43 = vmul.f32 %v462_v20, %v451_v11 }
  0x8f   : > { %v489_v26 = vadd.f32 %v485_v24, %v481_v22  ;;  %v483_v52 = vadd.f32 %v479_v43, %v475_v41 }
  0x90   : > { %v513_v27 = vpop.permute.xlu1 %512  ;;  %v509_v28 = vpop.permute.xlu0 %508 }
  0x91   : > { %493 = vst [vmem:[%s856_s21] sm:$0x3] %v489_v26  ;;  %v532_v32 = vmul.f32 %v513_v27, %v499_v25  ;;  %v526_v44 = vmul.f32 %v509_v28, %v498_v17 }
  0x93   : > { %v536_v33 = vadd.f32 %v532_v32, %v528_v31  ;;  %v530_v53 = vadd.f32 %v526_v44, %v522_v42 }
  0x94   : > { %v468_v34 = vpop.permute.xlu1 %467  ;;  %v464_v35 = vpop.permute.xlu0 %463 }
  0x95   : > { %540 = vst [vmem:[%s867_s26] sm:$0xf] %v536_v33  ;;  %v486_v39 = vmul.f32 %v468_v34, %v452_v18  ;;  %v480_v56 = vmul.f32 %v464_v35, %v451_v11 }
  0x97   : > { %v490_v40 = vadd.f32 %v486_v39, %v482_v37  ;;  %v484_v0 = vadd.f32 %v480_v56, %v476_v50 }
  0x98   : > { %v515_v45 = vpop.permute.xlu1 %514  ;;  %v511_v46 = vpop.permute.xlu0 %510 }
  0x99   : > { %494 = vst [vmem:[%s856_s21 + $0x2] sm:$0x3] %v490_v40  ;;  %v533_v48 = vmul.f32 %v515_v45, %v499_v25  ;;  %v527_v57 = vmul.f32 %v511_v46, %v498_v17 }
  0x9b   : > { %v537_v49 = vadd.f32 %v533_v48, %v529_v47  ;;  %v531_v1 = vadd.f32 %v527_v57, %v523_v51 }
  0x9c   : > { %v517_v54 = vpop.permute.xlu1 %516  ;;  %v470_v55 = vpop.permute.xlu0 %469 }
  0x9d   : > { %541 = vst [vmem:[%s867_s26 + $0x4] sm:$0xf] %v537_v49  ;;  %v534_v58 = vmul.f32 %v517_v54, %v499_v25  ;;  %v487_v59 = vmul.f32 %v470_v55, %v452_v18 }
  0x9f   : > { %v538_v60 = vadd.f32 %v534_v58, %v530_v53  ;;  %v491_v61 = vadd.f32 %v487_v59, %v483_v52 }
  0xa0   : > { %v519_v62 = vpop.permute.xlu1 %518  ;;  %v472_v63 = vpop.permute.xlu0 %471 }
  0xa1   : > { %542 = vst [vmem:[%s867_s26 + $0x8] sm:$0xf] %v538_v60  ;;  %495 = vst [vmem:[%s856_s21 + $0x4] sm:$0x3] %v491_v61  ;;  %v535_v2 = vmul.f32 %v519_v62, %v499_v25  ;;  %v488_v3 = vmul.f32 %v472_v63, %v452_v18 }
  0xa3   : > { %v539_v4 = vadd.f32 %v535_v2, %v531_v1  ;;  %v492_v5 = vadd.f32 %v488_v3, %v484_v0 }
  0xa5   : > { %543 = vst [vmem:[%s867_s26 + $0xc] sm:$0xf] %v539_v4  ;;  %496 = vst [vmem:[%s856_s21 + $0x6] sm:$0x3] %v492_v5 }
  0xa6 PF: > { %s20_s11 = sadd.s32 1, %s750_s11   ;;  %s895_s30 = smov %s746_s10 }
  0xa7   : > { %p17_p5 = scmp.ge.s32.totalorder %s20_s11, 4   ;;  %s896_s10 = smov %s898_s12 }
  0xa9   :  { %19 = sbr.rel (!%p17_p5) target bundleno = 2 (0x2), region = 101 }

</bundles_post_ra>
